<compile_context>
chip_gen: v7x
topology: tpu7x:2x2x1
jax: 0.10.0
libtpu: 0.0.40
codegen_flags: <defaults>
</compile_context>

<pallas_src>
import numpy as np
import jax
import jax.numpy as jnp
from jax.experimental import pallas as pl
from jax.experimental.pallas import tpu as pltpu


def _fused_cnn_kernel(x_ref, meo_ref, bc_ref, w1_ref, b1_ref, w2_ref, b2_ref,
                      o_ref):
    """conv + ReLU + maxpool + flatten + fc1 + ReLU + fc2, whole batch, one step."""
    Kp = bc_ref.shape[1]
    # One matmul produces both the even and odd conv taps, already laid out in
    # flattened (c*Tp + t) order in each half.
    ceco = jnp.dot(x_ref[...], meo_ref[...],
                   preferred_element_type=jnp.float32)               # (B, 2*Kp)
    # relu(max(even, odd) + bias) == maxpool(relu(conv)); padded columns stay 0.
    pooled = jnp.maximum(
        jnp.maximum(ceco[:, :Kp], ceco[:, Kp:]) + bc_ref[...], 0.0)  # (B, Kp)
    h = jnp.dot(pooled, w1_ref[...],
                preferred_element_type=jnp.float32) + b1_ref[...]    # (B, Hp)
    h = jnp.maximum(h, 0.0)
    o_ref[...] = jnp.dot(h, w2_ref[...],
                         preferred_element_type=jnp.float32) + b2_ref[...]


def prepare_params(params, L):
    """One-time host-side weight preparation (kept out of the per-call path)."""
    conv_w, conv_b, fc1_w, fc1_b, fc2_w, fc2_b = (
        np.asarray(p, np.float32) for p in params)
    C, _, K = conv_w.shape
    Lc = L - K + 1               # conv output length
    Tp = Lc // 2                 # true MaxPool1d(2) output length
    H, F = fc1_w.shape           # F == C * Tp
    NC = fc2_w.shape[0]
    assert F == C * Tp
    Kp = -(-F // 128) * 128      # flattened features padded to lanes (448 -> 512)
    Hp = -(-H // 128) * 128      # hidden dim padded to lanes (100 -> 128)
    NCp = -(-NC // 128) * 128    # classes padded to lanes (10 -> 128)

    # Toeplitz-style conv operand: column j = c*Tp + t holds channel c's taps
    # for pooled position t; left half reads conv position 2t, right half 2t+1.
    w = conv_w[:, 0, :]                                   # (C, K)
    Me = np.zeros((L, C, Tp), np.float32)
    Mo = np.zeros((L, C, Tp), np.float32)
    for t in range(Tp):
        for k in range(K):
            Me[2 * t + k, :, t] = w[:, k]
            Mo[2 * t + 1 + k, :, t] = w[:, k]
    Meo = np.zeros((L, 2 * Kp), np.float32)
    Meo[:, :F] = Me.reshape(L, F)
    Meo[:, Kp:Kp + F] = Mo.reshape(L, F)
    bc = np.zeros((1, Kp), np.float32); bc[0, :F] = np.repeat(conv_b, Tp)
    W1 = np.zeros((Kp, Hp), np.float32); W1[:F, :H] = fc1_w.T
    b1 = np.zeros((1, Hp), np.float32);  b1[0, :H] = fc1_b
    W2 = np.zeros((Hp, NCp), np.float32); W2[:H, :NC] = fc2_w.T
    b2 = np.zeros((1, NCp), np.float32);  b2[0, :NC] = fc2_b
    return tuple(jnp.asarray(a) for a in (Meo, bc, W1, b1, W2, b2)), NC


def make_forward(prepared, num_classes):
    """Returns a jitted forward: x (B, 1, L) f32 -> logits (B, num_classes)."""
    Meo, bc, W1, b1, W2, b2 = prepared
    L, Kp2 = Meo.shape
    Kp = bc.shape[1]
    Hp = W1.shape[1]
    NCp = W2.shape[1]

    @jax.jit
    def forward(x):
        B, c_in, Lx = x.shape
        assert c_in == 1 and Lx == L
        x2 = x.reshape(B, L).astype(jnp.float32)   # metadata-only channel squeeze
        # Dropout(p=0.2) is identity at inference (eval mode).
        out_p = pl.pallas_call(
            _fused_cnn_kernel,
            out_shape=jax.ShapeDtypeStruct((B, NCp), jnp.float32),
            grid=(1,),
            in_specs=[
                pl.BlockSpec((B, L), lambda i: (0, 0)),
                pl.BlockSpec((L, Kp2), lambda i: (0, 0)),
                pl.BlockSpec((1, Kp), lambda i: (0, 0)),
                pl.BlockSpec((Kp, Hp), lambda i: (0, 0)),
                pl.BlockSpec((1, Hp), lambda i: (0, 0)),
                pl.BlockSpec((Hp, NCp), lambda i: (0, 0)),
                pl.BlockSpec((1, NCp), lambda i: (0, 0)),
            ],
            out_specs=pl.BlockSpec((B, NCp), lambda i: (0, 0)),
            compiler_params=pltpu.CompilerParams(
                dimension_semantics=("arbitrary",)),
        )(x2, Meo, bc, W1, b1, W2, b2)
        return out_p[:, :num_classes]   # drop lane padding (fused under jit)

    return forward


def ref_forward(x, conv_w, conv_b, fc1_w, fc1_b, fc2_w, fc2_b):
    """Plain-JAX reference mirroring the PyTorch forward (eval mode)."""
    B, _, L = x.shape
    Lc = L - 2
    Tp = Lc // 2
    patches = jnp.stack([x[:, 0, k:k + Lc] for k in range(3)], axis=-1)  # (B, Lc, 3)
    conv = jnp.einsum('btk,ck->bct', patches, conv_w[:, 0, :]) + conv_b[None, :, None]
    conv = jnp.maximum(conv, 0.0)
    pooled = jnp.max(conv[:, :, :2 * Tp].reshape(B, conv.shape[1], Tp, 2), axis=-1)
    flat = pooled.reshape(B, -1)
    h = jnp.maximum(flat @ fc1_w.T + fc1_b, 0.0)
    return h @ fc2_w.T + fc2_b


if __name__ == "__main__":
    B, L, num_classes = 2, 16, 10
    Tp = (L - 2) // 2
    # TODO(synk): the original module sizes fc1 with (input_shape-2)//2 + 1,
    # which over-counts the true MaxPool1d(2) output length by 1 (it would
    # crash in torch); fc1 here is sized by the actual pooled length (L-2)//2.
    key = jax.random.PRNGKey(0)
    ks = jax.random.split(key, 7)
    conv_w = 0.2 * jax.random.normal(ks[0], (64, 1, 3), jnp.float32)
    conv_b = 0.1 * jax.random.normal(ks[1], (64,), jnp.float32)
    fc1_w = 0.05 * jax.random.normal(ks[2], (100, 64 * Tp), jnp.float32)
    fc1_b = 0.05 * jax.random.normal(ks[3], (100,), jnp.float32)
    fc2_w = 0.1 * jax.random.normal(ks[4], (num_classes, 100), jnp.float32)
    fc2_b = 0.1 * jax.random.normal(ks[5], (num_classes,), jnp.float32)
    x = jax.random.normal(ks[6], (B, 1, L), jnp.float32)
    params = (conv_w, conv_b, fc1_w, fc1_b, fc2_w, fc2_b)

    prepared, nc = prepare_params(params, L)        # one-time weight prep
    forward = make_forward(prepared, nc)            # one jitted executable
    out = jax.block_until_ready(forward(x))
    ref = jax.block_until_ready(ref_forward(x, *params))
    np.testing.assert_allclose(np.asarray(out), np.asarray(ref), rtol=1e-2, atol=1e-2)
    assert out.shape == (B, num_classes)
    print("KERNEL_OK")
</pallas_src>

<mosaic_0001>
module attributes {stable_mosaic.version = 11 : i64} {
  func.func @_fused_cnn_kernel(%arg0: i32, %arg1: memref<2x16xf32, #tpu.memory_space<vmem>>, %arg2: memref<16x1024xf32, #tpu.memory_space<vmem>>, %arg3: memref<1x512xf32, #tpu.memory_space<vmem>>, %arg4: memref<512x128xf32, #tpu.memory_space<vmem>>, %arg5: memref<1x128xf32, #tpu.memory_space<vmem>>, %arg6: memref<128x128xf32, #tpu.memory_space<vmem>>, %arg7: memref<1x128xf32, #tpu.memory_space<vmem>>, %arg8: memref<2x128xf32, #tpu.memory_space<vmem>>) attributes {dimension_semantics = [#tpu.dimension_semantics<arbitrary>], iteration_bounds = array<i64: 1>, scalar_prefetch = 0 : i64, scratch_operands = 0 : i64, tpu.core_type = #tpu.core_type<tc>, window_params = [{pipeline_mode = #tpu.pipeline_mode<synchronous>, transform_indices = @transform_0, window_bounds = array<i64: 2, 16>}, {pipeline_mode = #tpu.pipeline_mode<synchronous>, transform_indices = @transform_1, window_bounds = array<i64: 16, 1024>}, {pipeline_mode = #tpu.pipeline_mode<synchronous>, transform_indices = @transform_2, window_bounds = array<i64: 1, 512>}, {pipeline_mode = #tpu.pipeline_mode<synchronous>, transform_indices = @transform_3, window_bounds = array<i64: 512, 128>}, {pipeline_mode = #tpu.pipeline_mode<synchronous>, transform_indices = @transform_4, window_bounds = array<i64: 1, 128>}, {pipeline_mode = #tpu.pipeline_mode<synchronous>, transform_indices = @transform_5, window_bounds = array<i64: 128, 128>}, {pipeline_mode = #tpu.pipeline_mode<synchronous>, transform_indices = @transform_6, window_bounds = array<i64: 1, 128>}, {pipeline_mode = #tpu.pipeline_mode<synchronous>, transform_indices = @transform_7, window_bounds = array<i64: 2, 128>}]} {
    %c0 = arith.constant 0 : index
    %c0_0 = arith.constant 0 : index
    %0 = vector.load %arg1[%c0, %c0_0] : memref<2x16xf32, #tpu.memory_space<vmem>>, vector<2x16xf32>
    %c0_1 = arith.constant 0 : index
    %c0_2 = arith.constant 0 : index
    %1 = vector.load %arg2[%c0_1, %c0_2] : memref<16x1024xf32, #tpu.memory_space<vmem>>, vector<16x1024xf32>
    %cst = arith.constant dense<0.000000e+00> : vector<2x1024xf32>
    %2 = tpu.matmul %0, %1, %cst {dimension_numbers = #tpu.dot_dimension_numbers<[1], [0], [0], [1], [0, 0, 1, 1], [], []>} : vector<2x16xf32>, vector<16x1024xf32>, vector<2x1024xf32> -> vector<2x1024xf32>
    %3 = vector.extract_strided_slice %2 {offsets = [0, 0], sizes = [2, 512], strides = [1, 1]} : vector<2x1024xf32> to vector<2x512xf32>
    %4 = vector.extract_strided_slice %2 {offsets = [0, 512], sizes = [2, 512], strides = [1, 1]} : vector<2x1024xf32> to vector<2x512xf32>
    %5 = arith.maximumf %3, %4 : vector<2x512xf32>
    %c0_3 = arith.constant 0 : index
    %c0_4 = arith.constant 0 : index
    %6 = vector.load %arg3[%c0_3, %c0_4] : memref<1x512xf32, #tpu.memory_space<vmem>>, vector<1x512xf32>
    %7 = vector.broadcast %6 : vector<1x512xf32> to vector<2x512xf32>
    %8 = arith.addf %5, %7 : vector<2x512xf32>
    %cst_5 = arith.constant 0.000000e+00 : f32
    %9 = vector.broadcast %cst_5 : f32 to vector<2x512xf32>
    %10 = arith.maximumf %8, %9 : vector<2x512xf32>
    %c0_6 = arith.constant 0 : index
    %c0_7 = arith.constant 0 : index
    %11 = vector.load %arg4[%c0_6, %c0_7] : memref<512x128xf32, #tpu.memory_space<vmem>>, vector<512x128xf32>
    %cst_8 = arith.constant dense<0.000000e+00> : vector<2x128xf32>
    %12 = tpu.matmul %10, %11, %cst_8 {dimension_numbers = #tpu.dot_dimension_numbers<[1], [0], [0], [1], [0, 0, 1, 1], [], []>} : vector<2x512xf32>, vector<512x128xf32>, vector<2x128xf32> -> vector<2x128xf32>
    %c0_9 = arith.constant 0 : index
    %c0_10 = arith.constant 0 : index
    %13 = vector.load %arg5[%c0_9, %c0_10] : memref<1x128xf32, #tpu.memory_space<vmem>>, vector<1x128xf32>
    %14 = vector.broadcast %13 : vector<1x128xf32> to vector<2x128xf32>
    %15 = arith.addf %12, %14 : vector<2x128xf32>
    %cst_11 = arith.constant 0.000000e+00 : f32
    %16 = vector.broadcast %cst_11 : f32 to vector<2x128xf32>
    %17 = arith.maximumf %15, %16 : vector<2x128xf32>
    %c0_12 = arith.constant 0 : index
    %c0_13 = arith.constant 0 : index
    %18 = vector.load %arg6[%c0_12, %c0_13] : memref<128x128xf32, #tpu.memory_space<vmem>>, vector<128x128xf32>
    %cst_14 = arith.constant dense<0.000000e+00> : vector<2x128xf32>
    %19 = tpu.matmul %17, %18, %cst_14 {dimension_numbers = #tpu.dot_dimension_numbers<[1], [0], [0], [1], [0, 0, 1, 1], [], []>} : vector<2x128xf32>, vector<128x128xf32>, vector<2x128xf32> -> vector<2x128xf32>
    %c0_15 = arith.constant 0 : index
    %c0_16 = arith.constant 0 : index
    %20 = vector.load %arg7[%c0_15, %c0_16] : memref<1x128xf32, #tpu.memory_space<vmem>>, vector<1x128xf32>
    %21 = vector.broadcast %20 : vector<1x128xf32> to vector<2x128xf32>
    %22 = arith.addf %19, %21 : vector<2x128xf32>
    %c0_17 = arith.constant 0 : index
    %c0_18 = arith.constant 0 : index
    %23 = vector.load %arg8[%c0_17, %c0_18] : memref<2x128xf32, #tpu.memory_space<vmem>>, vector<2x128xf32>
    tpu.vector_store %arg8[%c0_17, %c0_18], %22 {strides = array<i32>} : memref<2x128xf32, #tpu.memory_space<vmem>>, vector<2x128xf32>,
    return
  }
  func.func @transform_0(%arg0: i32) -> (i32, i32) {
    %c0_i32 = arith.constant 0 : i32
    %c0_i32_0 = arith.constant 0 : i32
    %c0_i32_1 = arith.constant 0 : i32
    return %c0_i32, %c0_i32_0 : i32, i32
  }
  func.func @transform_1(%arg0: i32) -> (i32, i32) {
    %c0_i32 = arith.constant 0 : i32
    %c0_i32_0 = arith.constant 0 : i32
    %c0_i32_1 = arith.constant 0 : i32
    return %c0_i32, %c0_i32_0 : i32, i32
  }
  func.func @transform_2(%arg0: i32) -> (i32, i32) {
    %c0_i32 = arith.constant 0 : i32
    %c0_i32_0 = arith.constant 0 : i32
    %c0_i32_1 = arith.constant 0 : i32
    return %c0_i32, %c0_i32_0 : i32, i32
  }
  func.func @transform_3(%arg0: i32) -> (i32, i32) {
    %c0_i32 = arith.constant 0 : i32
    %c0_i32_0 = arith.constant 0 : i32
    %c0_i32_1 = arith.constant 0 : i32
    return %c0_i32, %c0_i32_0 : i32, i32
  }
  func.func @transform_4(%arg0: i32) -> (i32, i32) {
    %c0_i32 = arith.constant 0 : i32
    %c0_i32_0 = arith.constant 0 : i32
    %c0_i32_1 = arith.constant 0 : i32
    return %c0_i32, %c0_i32_0 : i32, i32
  }
  func.func @transform_5(%arg0: i32) -> (i32, i32) {
    %c0_i32 = arith.constant 0 : i32
    %c0_i32_0 = arith.constant 0 : i32
    %c0_i32_1 = arith.constant 0 : i32
    return %c0_i32, %c0_i32_0 : i32, i32
  }
  func.func @transform_6(%arg0: i32) -> (i32, i32) {
    %c0_i32 = arith.constant 0 : i32
    %c0_i32_0 = arith.constant 0 : i32
    %c0_i32_1 = arith.constant 0 : i32
    return %c0_i32, %c0_i32_0 : i32, i32
  }
  func.func @transform_7(%arg0: i32) -> (i32, i32) {
    %c0_i32 = arith.constant 0 : i32
    %c0_i32_0 = arith.constant 0 : i32
    %c0_i32_1 = arith.constant 0 : i32
    return %c0_i32, %c0_i32_0 : i32, i32
  }
}

</mosaic_0001>

<bundles_post_ra>
// kernel: forward.1
= control target key start
LH: loop header
LB: loop body
LE: loop exit
PB: predicated region body
PF: predicated region fallthrough
CT: control target
= control target key end

     0   :  { %12 = vsyncpa [#allocation3], 0  ;;  %s1206_s0 = inlined_call_operand.vmem [shape: f32[2,16], index: 0, kind: input, shape index: {}]   ;;  %s1207_s1 = inlined_call_operand.hbm [shape: f32[16,1024], index: 1, kind: input, shape index: {}]   ;;  %s1208_s2 = inlined_call_operand.vmem [shape: f32[1,512], index: 2, kind: input, shape index: {}]   ;;  %s1209_s3 = inlined_call_operand.hbm [shape: f32[512,128], index: 3, kind: input, shape index: {}]   ;;  %s1210_s4 = inlined_call_operand.vmem [shape: f32[1,128], index: 4, kind: input, shape index: {}]   ;;  %s1211_s5 = inlined_call_operand.hbm [shape: f32[128,128], index: 5, kind: input, shape index: {}]   ;;  %s1212_s6 = inlined_call_operand.vmem [shape: f32[1,128], index: 6, kind: input, shape index: {}]   ;;  %s1213_s7 = inlined_call_operand.hbm [shape: f32[2,128], index: 7, kind: output, shape index: {}]  }
   0x1   :  { %13 = vsyncpa [#allocation6], 0 }
   0x2   :  { %14 = vsyncpa [#allocation4], 0  ;;  %s1066_s24 = smov [#allocation5]   ;;  %s972_s28 = scalar_lea.hbm %s1209_s3, 8192 }
   0x3   :  { %s36_s25 = sshll.u32 %s1066_s24, 4  ;;  %p973_p0 = scmp.ne.s32.totalorder %s1209_s3, %s972_s28  ;;  %s37_s25 = int_to_ptr.vmem [resolvable:$true] %s36_s25 }
   0x4   :  { %p976_p1 = scmp.lt.u32.totalorder %s972_s28, %s1209_s3 }
   0x6   :  { %p978_p2 = pnand %p976_p1, %p973_p0 }
   0x8   :  { %981 = shalt.err (!%p978_p2)
}
   0x9   :  { %s982_s10 = scalar_lea.vmem %s37_s25, 8192  ;;  %p987_p4 = scmp.lt.s32.totalorder %s37_s25, %s37_s25 }
   0xa   :  { %p983_p3 = scmp.ne.s32.totalorder %s37_s25, %s982_s10  ;;  %p988_p5 = scmp.lt.s32.totalorder %s982_s10, %s982_s10 }
   0xc   :  { %p989_p6 = por %p988_p5, %p987_p4 }
   0xe   :  { %p990_p7 = pnand %p989_p6, %p983_p3 }
  0x10   :  { %993 = shalt.err (!%p990_p7)
}
  0x11   :  { %s1067_s11 = smov 128   ;;  %s1068_s12 = smov 8  }
  0x12   :  { %42 = dma.hbm_to_vmem [thread:$0]  %s1209_s3, 8192, %s37_s25, [#allocation6], %s1067_s11, %s1067_s11, %s1068_s12  }
  0x13   :  { %s1069_s15 = smov [#allocation2]   ;;  %s994_s19 = scalar_lea.hbm %s1207_s1, 2048 }
  0x14   :  { %s22_s16 = sshll.u32 %s1069_s15, 4  ;;  %p995_p8 = scmp.ne.s32.totalorder %s1207_s1, %s994_s19  ;;  %s23_s16 = int_to_ptr.vmem [resolvable:$true] %s22_s16 }
  0x15   :  { %p998_p9 = scmp.lt.u32.totalorder %s994_s19, %s1207_s1 }
  0x17   :  { %p1000_p10 = pnand %p998_p9, %p995_p8 }
  0x19   :  { %1003 = shalt.err (!%p1000_p10)
}
  0x1a   :  { %s1004_s24 = scalar_lea.vmem %s23_s16, 2048  ;;  %p1009_p12 = scmp.lt.s32.totalorder %s23_s16, %s23_s16 }
  0x1b   :  { %p1005_p11 = scmp.ne.s32.totalorder %s23_s16, %s1004_s24  ;;  %p1010_p13 = scmp.lt.s32.totalorder %s1004_s24, %s1004_s24 }
  0x1d   :  { %p1011_p0 = por %p1010_p13, %p1009_p12 }
  0x1f   :  { %p1012_p1 = pnand %p1011_p0, %p1005_p11 }
  0x21   :  { %1015 = shalt.err (!%p1012_p1)
}
  0x22   :  { %s1070_s3 = smov 1024   ;;  %s1071_s25 = smov 64  }
  0x23   :  { %28 = dma.hbm_to_vmem [thread:$0]  %s1207_s1, 2048, %s23_s16, [#allocation3], %s1070_s3, %s1070_s3, %s1071_s25  }
  0x24   :  { %s1072_s28 = smov [#allocation7]   ;;  %s1016_s9 = scalar_lea.hbm %s1211_s5, 2048 }
  0x25   :  { %s50_s29 = sshll.u32 %s1072_s28, 4  ;;  %p1017_p2 = scmp.ne.s32.totalorder %s1211_s5, %s1016_s9  ;;  %s51_s29 = int_to_ptr.vmem [resolvable:$true] %s50_s29 }
  0x26   :  { %p1020_p3 = scmp.lt.u32.totalorder %s1016_s9, %s1211_s5 }
  0x28   :  { %p1022_p4 = pnand %p1020_p3, %p1017_p2 }
  0x2a   :  { %1025 = shalt.err (!%p1022_p4)
}
  0x2b   :  { %s1026_s17 = scalar_lea.vmem %s51_s29, 2048  ;;  %p1031_p6 = scmp.lt.s32.totalorder %s51_s29, %s51_s29 }
  0x2c   :  { %p1027_p5 = scmp.ne.s32.totalorder %s51_s29, %s1026_s17  ;;  %p1032_p7 = scmp.lt.s32.totalorder %s1026_s17, %s1026_s17 }
  0x2e   :  { %p1033_p8 = por %p1032_p7, %p1031_p6 }
  0x30   :  { %p1034_p9 = pnand %p1033_p8, %p1027_p5 }
  0x32   :  { %1037 = shalt.err (!%p1034_p9)
}
  0x33   :  { %56 = dma.hbm_to_vmem [thread:$0]  %s1211_s5, 2048, %s51_s29, [#allocation6], %s1067_s11, %s1067_s11, %s1068_s12  }
  0x34   :  { %1060 = dma.done.wait [#allocation3], 2048  }
  0x35   :  { %1061 = vsyncadd [#allocation3], 4294965248 }
  0x36   :  { %1062 = dma.done.wait [#allocation6], 10240  }
  0x37   :  { %1063 = vsyncadd [#allocation6], 4294957056  ;;  %v1073_v0 = vmov 0.0   ;;  %v70_v1 = vld [vmem:[#allocation2 + $0x8] sm:$0xff]  ;;  %v69_v3 = vld [vmem:[#allocation2] sm:$0xff]  ;;  %vm85_vm0 = vcmask 130048  }
  0x38   :  { %153 = vmatprep.mubr.f32.mxu1 %v1073_v0  ;;  %v78_v2 = vld [vmem:[#allocation2 + $0x48] sm:$0xff]  ;;  %v77_v5 = vld [vmem:[#allocation2 + $0x40] sm:$0xff]  ;;  %v72_v6 = vld [vmem:[#allocation2 + $0x18] sm:$0xff]  ;;  %vm1075_vm1 = vmmov 0   ;;  %s1076_s21 = smov [#allocation8]  }
  0x39   :  { %v857_v4 = vpack.c.bf16 %v78_v2, %v70_v1  ;;  %v859_v7 = vpack.c.bf16 %v77_v5, %v69_v3  ;;  %v80_v8 = vld [vmem:[#allocation2 + $0x58] sm:$0xff]  ;;  %v71_v9 = vld [vmem:[#allocation2 + $0x10] sm:$0xff]  ;;  %v74_v12 = vld [vmem:[#allocation2 + $0x28] sm:$0xff]  ;;  %s719_s22 = sshll.u32 %s1076_s21, 4  ;;  %s720_s22 = int_to_ptr.vmem [resolvable:$true] %s719_s22 }
  0x3a   :  { %v79_v10 = vld [vmem:[#allocation2 + $0x50] sm:$0xff]  ;;  %v861_v11 = vpack.c.bf16 %v80_v8, %v72_v6  ;;  %v82_v13 = vld [vmem:[#allocation2 + $0x68] sm:$0xff]  ;;  %v1163_v14 = vld [vmem:[%s1206_s0] sm:$0x3]  ;;  %s1038_s23 = scalar_lea.vmem %s720_s22, 32  ;;  %p1043_p11 = scmp.lt.s32.totalorder %s720_s22, %s720_s22 }
  0x3b   :  { %858 = vmatprep.subr.bf16.mxu1 %v857_v4  ;;  %v863_v15 = vpack.c.bf16 %v79_v10, %v71_v9  ;;  %v73_v16 = vld [vmem:[#allocation2 + $0x20] sm:$0xff]  ;;  %v865_v18 = vpack.c.bf16 %v82_v13, %v74_v12  ;;  %v76_v19 = vld [vmem:[#allocation2 + $0x38] sm:$0xff]  ;;  %v424_v22 = vld [vmem:[#allocation5 + $0x88] sm:$0xff]  ;;  %p1039_p10 = scmp.ne.s32.totalorder %s720_s22, %s1038_s23  ;;  %p1044_p12 = scmp.lt.s32.totalorder %s1038_s23, %s1038_s23 }
  0x3c   :  { %860 = vmatpush1.bf16.msra.mxu1 %v859_v7  ;;  %v81_v17 = vld [vmem:[#allocation2 + $0x60] sm:$0xff]  ;;  %v84_v20 = vld [vmem:[#allocation2 + $0x78] sm:$0xff]  ;;  %v408_v24 = vld [vmem:[#allocation5 + $0x8] sm:$0xff] }
  0x3d   :  { %862 = vmatprep.subr.bf16.mxu1 %v861_v11  ;;  %v423_v21 = vld [vmem:[#allocation5 + $0x80] sm:$0xff]  ;;  %v425_v27 = vld [vmem:[#allocation5 + $0x90] sm:$0xff]  ;;  %v426_v28 = vld [vmem:[#allocation5 + $0x98] sm:$0xff]  ;;  %v867_v29 = vpack.c.bf16 %v81_v17, %v73_v16  ;;  %v869_v33 = vpack.c.bf16 %v84_v20, %v76_v19  ;;  %p1045_p13 = por %p1044_p12, %p1043_p11 }
  0x3e   :  { %v407_v23 = vld [vmem:[#allocation5] sm:$0xff]  ;;  %v873_v25 = vpack.c.bf16 %v424_v22, %v423_v21  ;;  %v877_v30 = vpack.c.bf16 %v426_v28, %v425_v27  ;;  %v409_v31 = vld [vmem:[#allocation5 + $0x10] sm:$0xff]  ;;  %v410_v32 = vld [vmem:[#allocation5 + $0x18] sm:$0xff] }
  0x3f   :  { %729 = vmatmul.mubr.msk.f32.vlgmr.msra.gmra.mrb[0].mxu1 %vm85_vm0, %v1163_v14  ;;  %v875_v26 = vpack.c.bf16 %v408_v24, %v407_v23  ;;  %v75_v34 = vld [vmem:[#allocation2 + $0x30] sm:$0xff]  ;;  %v427_v36 = vld [vmem:[#allocation5 + $0xa0] sm:$0xff]  ;;  %v456_v38 = vld [vmem:[#allocation5 + $0x188] sm:$0xff]  ;;  %v879_v39 = vpack.c.bf16 %v410_v32, %v409_v31  ;;  %p1046_p0 = pnand %p1045_p13, %p1039_p10 }
  0x40   :  { %864 = vmatpush1.bf16.msra.mxu1 %v863_v15  ;;  %224 = vmatprep.mubr.f32.mxu1 %v1073_v0  ;;  %v83_v35 = vld [vmem:[#allocation2 + $0x70] sm:$0xff]  ;;  %v455_v37 = vld [vmem:[#allocation5 + $0x180] sm:$0xff]  ;;  %v428_v40 = vld [vmem:[#allocation5 + $0xa8] sm:$0xff] }
  0x41   :  { %866 = vmatprep.subr.bf16.mxu1 %v865_v18  ;;  %874 = vmatprep.subr.bf16.mxu0 %v873_v25  ;;  %v881_v41 = vpack.c.bf16 %v428_v40, %v427_v36  ;;  %v411_v42 = vld [vmem:[#allocation5 + $0x20] sm:$0xff]  ;;  %v412_v43 = vld [vmem:[#allocation5 + $0x28] sm:$0xff]  ;;  %v871_v44 = vpack.c.bf16 %v83_v35, %v75_v34  ;;  %v429_v45 = vld [vmem:[#allocation5 + $0xb0] sm:$0xff]  ;;  %v905_v47 = vpack.c.bf16 %v456_v38, %v455_v37 }
  0x42   :  { %876 = vmatpush3.bf16.msra.mxu0 %v875_v26  ;;  %v430_v46 = vld [vmem:[#allocation5 + $0xb8] sm:$0xff]  ;;  %v439_v48 = vld [vmem:[#allocation5 + $0x100] sm:$0xff]  ;;  %v440_v49 = vld [vmem:[#allocation5 + $0x108] sm:$0xff]  ;;  %v883_v52 = vpack.c.bf16 %v412_v43, %v411_v42 }
  0x43   :  { %730 = vmatmul.mubr.msk.f32.vlgmr.msra.gmra.mrb[2].mxu1 %vm85_vm0, %v1163_v14  ;;  %878 = vmatprep.subr.bf16.mxu0 %v877_v30  ;;  %v457_v50 = vld [vmem:[#allocation5 + $0x190] sm:$0xff]  ;;  %v458_v51 = vld [vmem:[#allocation5 + $0x198] sm:$0xff]  ;;  %v885_v53 = vpack.c.bf16 %v430_v46, %v429_v45  ;;  %v907_v56 = vpack.c.bf16 %v440_v49, %v439_v48  ;;  %v459_v60 = vld [vmem:[#allocation5 + $0x1a0] sm:$0xff] }
  0x44   :  { %868 = vmatpush1.bf16.msra.mxu1 %v867_v29  ;;  %295 = vmatprep.mubr.f32.mxu1 %v1073_v0  ;;  %v413_v54 = vld [vmem:[#allocation5 + $0x30] sm:$0xff]  ;;  %v414_v55 = vld [vmem:[#allocation5 + $0x38] sm:$0xff]  ;;  %v909_v57 = vpack.c.bf16 %v458_v51, %v457_v50  ;;  %v460_v61 = vld [vmem:[#allocation5 + $0x1a8] sm:$0xff] }
  0x45   :  { %870 = vmatprep.subr.bf16.mxu1 %v869_v33  ;;  %v441_v58 = vld [vmem:[#allocation5 + $0x110] sm:$0xff]  ;;  %v442_v59 = vld [vmem:[#allocation5 + $0x118] sm:$0xff]  ;;  %v887_v62 = vpack.c.bf16 %v414_v55, %v413_v54  ;;  %v913_v1 = vpack.c.bf16 %v460_v61, %v459_v60  ;;  %v443_v2 = vld [vmem:[#allocation5 + $0x120] sm:$0xff]  ;;  %v379_v60 = vlaneseq }
  0x46   :  { %880 = vmatpush3.bf16.msra.mxu0 %v879_v39  ;;  %v911_v63 = vpack.c.bf16 %v442_v59, %v441_v58  ;;  %v444_v3 = vld [vmem:[#allocation5 + $0x128] sm:$0xff]  ;;  %v431_v5 = vld [vmem:[#allocation5 + $0xc0] sm:$0xff]  ;;  %v461_v7 = vld [vmem:[#allocation5 + $0x1b0] sm:$0xff]  ;;  %v1074_v59 = vmov 0.0|0.0  }
  0x47   :  { %731 = vmatmul.mubr.msk.f32.vlgmr.msra.gmra.mrb[4].mxu1 %vm85_vm0, %v1163_v14  ;;  %882 = vmatprep.subr.bf16.mxu0 %v881_v41  ;;  %v915_v4 = vpack.c.bf16 %v444_v3, %v443_v2  ;;  %v432_v6 = vld [vmem:[#allocation5 + $0xc8] sm:$0xff]  ;;  %v462_v9 = vld [vmem:[#allocation5 + $0x1b8] sm:$0xff]  ;;  %v415_v10 = vld [vmem:[#allocation5 + $0x40] sm:$0xff]  ;;  %v380_v61 = vshrl.u32 %v379_v60, 7 }
  0x48   :  { %872 = vmatpush1.bf16.msra.mxu1 %v871_v44  ;;  %366 = vmatprep.mubr.f32.mxu1 %v1073_v0  ;;  %v889_v8 = vpack.c.bf16 %v432_v6, %v431_v5  ;;  %v416_v11 = vld [vmem:[#allocation5 + $0x48] sm:$0xff]  ;;  %v917_v12 = vpack.c.bf16 %v462_v9, %v461_v7  ;;  %v446_v15 = vld [vmem:[#allocation5 + $0x138] sm:$0xff]  ;;  %v433_v17 = vld [vmem:[#allocation5 + $0xd0] sm:$0xff] }
  0x49   :  { %906 = vmatprep.subr.bf16.mxu1 %v905_v47  ;;  %v891_v13 = vpack.c.bf16 %v416_v11, %v415_v10  ;;  %v434_v18 = vld [vmem:[#allocation5 + $0xd8] sm:$0xff]  ;;  %v463_v19 = vld [vmem:[#allocation5 + $0x1c0] sm:$0xff]  ;;  %v464_v21 = vld [vmem:[#allocation5 + $0x1c8] sm:$0xff]  ;;  %v389_v7 = vsub.s32 2, %v380_v61  ;;  %v393_v9 = vsub.s32 3, %v380_v61 }
  0x4a   :  { %884 = vmatpush3.bf16.msra.mxu0 %v883_v52  ;;  %v893_v20 = vpack.c.bf16 %v434_v18, %v433_v17  ;;  %v417_v22 = vld [vmem:[#allocation5 + $0x50] sm:$0xff]  ;;  %v418_v23 = vld [vmem:[#allocation5 + $0x58] sm:$0xff]  ;;  %v921_v24 = vpack.c.bf16 %v464_v21, %v463_v19  ;;  %v447_v26 = vld [vmem:[#allocation5 + $0x140] sm:$0xff] }
  0x4b   :  { %732 = vmatmul.mubr.msk.f32.vlgmr.msra.gmra.mrb[6].mxu1 %vm85_vm0, %v1163_v14  ;;  %886 = vmatprep.subr.bf16.mxu0 %v885_v53  ;;  %v445_v14 = vld [vmem:[#allocation5 + $0x130] sm:$0xff]  ;;  %v895_v25 = vpack.c.bf16 %v418_v23, %v417_v22  ;;  %v448_v27 = vld [vmem:[#allocation5 + $0x148] sm:$0xff]  ;;  %v435_v29 = vld [vmem:[#allocation5 + $0xe0] sm:$0xff] }
  0x4c   :  { %908 = vmatpush3.bf16.msra.mxu1 %v907_v56  ;;  %v919_v16 = vpack.c.bf16 %v446_v15, %v445_v14  ;;  %v923_v28 = vpack.c.bf16 %v448_v27, %v447_v26  ;;  %v436_v30 = vld [vmem:[#allocation5 + $0xe8] sm:$0xff]  ;;  %v465_v31 = vld [vmem:[#allocation5 + $0x1d0] sm:$0xff]  ;;  %v466_v33 = vld [vmem:[#allocation5 + $0x1d8] sm:$0xff] }
  0x4d   :  { %910 = vmatprep.subr.bf16.mxu1 %v909_v57  ;;  %v897_v32 = vpack.c.bf16 %v436_v30, %v435_v29  ;;  %v419_v34 = vld [vmem:[#allocation5 + $0x60] sm:$0xff]  ;;  %v420_v35 = vld [vmem:[#allocation5 + $0x68] sm:$0xff]  ;;  %v925_v36 = vpack.c.bf16 %v466_v33, %v465_v31  ;;  %v449_v38 = vld [vmem:[#allocation5 + $0x150] sm:$0xff] }
  0x4e   :  { %888 = vmatpush3.bf16.msra.mxu0 %v887_v62  ;;  %v899_v37 = vpack.c.bf16 %v420_v35, %v419_v34  ;;  %v450_v39 = vld [vmem:[#allocation5 + $0x158] sm:$0xff]  ;;  %v437_v41 = vld [vmem:[#allocation5 + $0xf0] sm:$0xff]  ;;  %v467_v43 = vld [vmem:[#allocation5 + $0x1e0] sm:$0xff] }
  0x4f   :  { %890 = vmatprep.subr.bf16.mxu0 %v889_v8  ;;  %v927_v40 = vpack.c.bf16 %v450_v39, %v449_v38  ;;  %v438_v42 = vld [vmem:[#allocation5 + $0xf8] sm:$0xff]  ;;  %v468_v45 = vld [vmem:[#allocation5 + $0x1e8] sm:$0xff]  ;;  %v421_v46 = vld [vmem:[#allocation5 + $0x70] sm:$0xff] }
  0x50   :  { %912 = vmatpush3.bf16.msra.mxu1 %v911_v63  ;;  %v901_v44 = vpack.c.bf16 %v438_v42, %v437_v41  ;;  %v422_v47 = vld [vmem:[#allocation5 + $0x78] sm:$0xff]  ;;  %v929_v48 = vpack.c.bf16 %v468_v45, %v467_v43  ;;  %v451_v50 = vld [vmem:[#allocation5 + $0x160] sm:$0xff]  ;;  %v452_v51 = vld [vmem:[#allocation5 + $0x168] sm:$0xff] }
  0x51   :  { %914 = vmatprep.subr.bf16.mxu1 %v913_v1  ;;  %v903_v49 = vpack.c.bf16 %v422_v47, %v421_v46  ;;  %v931_v52 = vpack.c.bf16 %v452_v51, %v451_v50  ;;  %v469_v53 = vld [vmem:[#allocation5 + $0x1f0] sm:$0xff]  ;;  %v470_v54 = vld [vmem:[#allocation5 + $0x1f8] sm:$0xff]  ;;  %v381_v1 = vsub.s32 0, %v380_v61  ;;  %v377_v3 = vld [vmem:[%s1208_s2] sm:$0xf] }
  0x52   :  { %892 = vmatpush3.bf16.msra.mxu0 %v891_v13  ;;  %v933_v55 = vpack.c.bf16 %v470_v54, %v469_v53  ;;  %v453_v56 = vld [vmem:[#allocation5 + $0x170] sm:$0xff]  ;;  %v454_v57 = vld [vmem:[#allocation5 + $0x178] sm:$0xff]  ;;  %v390_v15 = vrot.slane %v377_v3, %v389_v7  ;;  %v620_v17 = vld [vmem:[#allocation7 + $0x8] sm:$0xff]  ;;  %v394_v19 = vrot.slane %v377_v3, %v393_v9 }
  0x53   :  { %894 = vmatprep.subr.bf16.mxu0 %v893_v20  ;;  %v935_v58 = vpack.c.bf16 %v454_v57, %v453_v56  ;;  %v382_v6 = vrot.slane %v377_v3, %v381_v1  ;;  %v622_v29 = vld [vmem:[#allocation7 + $0x18] sm:$0xff]  ;;  %v623_v34 = vld [vmem:[#allocation7 + $0x20] sm:$0xff]  ;;  %v624_v35 = vld [vmem:[#allocation7 + $0x28] sm:$0xff] }
  0x54   :  { %916 = vmatpush3.bf16.msra.mxu1 %v915_v4  ;;  %v385_v4 = vsub.s32 1, %v380_v61  ;;  %v626_v38 = vld [vmem:[#allocation7 + $0x38] sm:$0xff]  ;;  %v628_v41 = vld [vmem:[#allocation7 + $0x48] sm:$0xff]  ;;  %v629_v43 = vld [vmem:[#allocation7 + $0x50] sm:$0xff] }
  0x55   :  { %918 = vmatprep.subr.bf16.mxu1 %v917_v12  ;;  %v631_v46 = vld [vmem:[#allocation7 + $0x60] sm:$0xff]  ;;  %v632_v47 = vld [vmem:[#allocation7 + $0x68] sm:$0xff]  ;;  %v634_v50 = vld [vmem:[#allocation7 + $0x78] sm:$0xff] }
  0x56   :  { %896 = vmatpush3.bf16.msra.mxu0 %v895_v25  ;;  %v386_v10 = vrot.slane %v377_v3, %v385_v4 }
  0x57   :  { %898 = vmatprep.subr.bf16.mxu0 %v897_v32 }
  0x58   :  { %920 = vmatpush3.bf16.msra.mxu1 %v919_v16  ;;  %v619_v16 = vld [vmem:[#allocation7] sm:$0xff] }
  0x59   :  { %922 = vmatprep.subr.bf16.mxu1 %v921_v24  ;;  %v938_v25 = vpack.c.bf16 %v620_v17, %v619_v16 }
  0x5a   :  { %900 = vmatpush3.bf16.msra.mxu0 %v899_v37  ;;  %v625_v37 = vld [vmem:[#allocation7 + $0x30] sm:$0xff] }
  0x5b   :  { %902 = vmatprep.subr.bf16.mxu0 %v901_v44  ;;  %v947_v39 = vpack.c.bf16 %v626_v38, %v625_v37  ;;  %v630_v44 = vld [vmem:[#allocation7 + $0x58] sm:$0xff] }
  0x5c   :  { %924 = vmatpush3.bf16.msra.mxu1 %v923_v28  ;;  %v621_v28 = vld [vmem:[#allocation7 + $0x10] sm:$0xff]  ;;  %v953_v45 = vpack.c.bf16 %v630_v44, %v629_v43 }
  0x5d   :  { %926 = vmatprep.subr.bf16.mxu1 %v925_v36  ;;  %v941_v32 = vpack.c.bf16 %v622_v29, %v621_v28  ;;  %v944_v36 = vpack.c.bf16 %v624_v35, %v623_v34 }
  0x5e   :  { %904 = vmatpush3.bf16.msra.mxu0 %v903_v49  ;;  %v633_v49 = vld [vmem:[#allocation7 + $0x70] sm:$0xff] }
  0x5f   :  { %937 = vmatprep.subr.bf16.mxu0 %v1074_v59  ;;  %v959_v51 = vpack.c.bf16 %v634_v50, %v633_v49 }
  0x60   :  { %928 = vmatpush3.bf16.msra.mxu1 %v927_v40  ;;  %v627_v40 = vld [vmem:[#allocation7 + $0x40] sm:$0xff] }
  0x61   :  { %930 = vmatprep.subr.bf16.mxu1 %v929_v48  ;;  %v950_v42 = vpack.c.bf16 %v628_v41, %v627_v40  ;;  %v956_v48 = vpack.c.bf16 %v632_v47, %v631_v46 }
  0x64   :  { %932 = vmatpush3.bf16.msra.mxu1 %v931_v52 }
  0x65   :  { %934 = vmatprep.subr.bf16.mxu1 %v933_v55  ;;  %v733_v55 = vld [vmem:[%s1210_s4] ss:$0 sm:$0xff] }
  0x68   :  { %936 = vmatpush3.bf16.msra.mxu1 %v935_v58 }
 0x112   :  { %v155_v62 = vpop.f32.mrb[0].mxu1 }
 0x113   :  { %v157_v63 = vpop.f32.mrb[1].mxu1 }
 0x116   :  { %v226_v2 = vpop.f32.mrb[2].mxu1 }
 0x117   :  { %v228_v5 = vpop.f32.mrb[3].mxu1 }
 0x11a   :  { %v297_v8 = vpop.f32.mrb[4].mxu1 }
 0x11b   :  { %v373_v11 = vmax.f32 %v155_v62, %v297_v8  ;;  %v299_v12 = vpop.f32.mrb[5].mxu1  ;;  %v734_v62 = vld [vmem:[%s1212_s6] ss:$0 sm:$0xff] }
 0x11c   :  { %v374_v13 = vmax.f32 %v157_v63, %v299_v12 }
 0x11d   :  { %v399_v14 = vadd.f32 %v382_v6, %v373_v11 }
 0x11e   :  { %v368_v18 = vpop.f32.mrb[6].mxu1  ;;  %v400_v20 = vadd.f32 %v386_v10, %v374_v13 }
 0x11f   :  { %v375_v21 = vmax.f32 %v226_v2, %v368_v18  ;;  %v370_v22 = vpop.f32.mrb[7].mxu1  ;;  %v403_v26 = vmax.f32 %v399_v14, 0.0 }
 0x120   :  { %v376_v23 = vmax.f32 %v228_v5, %v370_v22  ;;  %v404_v24 = vmax.f32 %v400_v20, 0.0 }
 0x121   :  { %v401_v27 = vadd.f32 %v390_v15, %v375_v21 }
 0x122   :  { %v402_v30 = vadd.f32 %v394_v19, %v376_v23  ;;  %542 = vmatprep.mubr.f32.mxu0 %v404_v24 }
 0x123   :  { %543 = vmatmul.mubr.f32.vlgmr.msra.gmra.mrb[0].mxu0 %v403_v26  ;;  %v405_v33 = vmax.f32 %v401_v27, 0.0 }
 0x124   :  { %v406_v31 = vmax.f32 %v402_v30, 0.0  ;;  %939 = vmatpush3.bf16.msra.mxu0 %v938_v25  ;;  %854 = vmatprep.mubr.msk.f32.mxu0 %vm1075_vm1, %v1073_v0 }
 0x125   :  { %940 = vmatprep.subr.bf16.mxu0 %v1074_v59 }
 0x126   :  { %612 = vmatprep.mubr.f32.mxu1 %v406_v31 }
 0x127   :  { %613 = vmatmul.mubr.f32.vlgmr.msra.gmra.mrb[8].mxu1 %v405_v33 }
 0x128   :  { %942 = vmatpush3.bf16.msra.mxu0 %v941_v32 }
 0x129   :  { %943 = vmatprep.subr.bf16.mxu0 %v1074_v59 }
 0x12c   :  { %945 = vmatpush3.bf16.msra.mxu0 %v944_v36 }
 0x12d   :  { %946 = vmatprep.subr.bf16.mxu0 %v1074_v59 }
 0x130   :  { %948 = vmatpush3.bf16.msra.mxu0 %v947_v39 }
 0x131   :  { %949 = vmatprep.subr.bf16.mxu0 %v1074_v59 }
 0x134   :  { %951 = vmatpush3.bf16.msra.mxu0 %v950_v42 }
 0x135   :  { %952 = vmatprep.subr.bf16.mxu0 %v1074_v59 }
 0x138   :  { %954 = vmatpush3.bf16.msra.mxu0 %v953_v45 }
 0x139   :  { %955 = vmatprep.subr.bf16.mxu0 %v1074_v59 }
 0x13c   :  { %957 = vmatpush3.bf16.msra.mxu0 %v956_v48 }
 0x13d   :  { %958 = vmatprep.subr.bf16.mxu0 %v1074_v59 }
 0x140   :  { %960 = vmatpush3.bf16.msra.mxu0 %v959_v51 }
 0x1f6   :  { %v767_v52 = vpop.f32.mrb[0].mxu0 }
 0x1f7   :  { %v768_v53 = vpop.f32.mrb[1].mxu0 }
 0x1f8   :  { %v769_v54 = vadd.f32 %v768_v53, %v767_v52 }
 0x1fa   :  { %v802_v56 = vpop.f32.mrb[8].mxu1  ;;  %v545_v58 = vadd.f32 %v769_v54, %v733_v55 }
 0x1fb   :  { %v803_v57 = vpop.f32.mrb[9].mxu1 }
 0x1fc   :  { %v804_v60 = vadd.f32 %v803_v57, %v802_v56 }
 0x1fe   :  { %v615_v61 = vadd.f32 %v804_v60, %v545_v58 }
 0x200   :  { %v618_v59 = vmax.f32 %v615_v61, 0.0 }
 0x202   :  { %855 = vmatmul.mubr.f32.vlgmr.msra.gmra.mrb[2].mxu0 %v618_v59 }
 0x2d5   :  { %v708_v0 = vpop.f32.mrb[2].mxu0 }
 0x2d6   :  { %v709_v63 = vadd.f32 %v734_v62, %v708_v0  ;;  %v856_v1 = vpop.f32.mrb[3].mxu0 }
 0x2d8   :  { %712 = vst [vmem:[#allocation8] sm:$0x3] %v709_v63 }
 0x2d9   :  { %1049 = shalt.err (!%p1046_p0)
}
 0x2da   :  { %s1050_s3 = scalar_lea.hbm %s1213_s7, 32 }
 0x2db   :  { %p1051_p1 = scmp.ne.s32.totalorder %s1213_s7, %s1050_s3  ;;  %p1054_p2 = scmp.lt.u32.totalorder %s1050_s3, %s1213_s7 }
 0x2dd   :  { %p1056_p3 = pnand %p1054_p2, %p1051_p1 }
 0x2df   :  { %1059 = shalt.err (!%p1056_p3)
}
 0x2e0   :  { %722 = dma.vmem_to_hbm [thread:$0]  %s720_s22, 32, %s1213_s7, [#allocation4]  }
 0x2e1   :  { %1064 = dma.done.wait [#allocation4], 32  }
 0x2e2   :  { %1065 = vsyncadd [#allocation4], 4294967264 }
 0x2e3   :  { %726 = vsyncpa [#allocation3], 1 }
 0x2e4   :  { %727 = vsyncpa [#allocation6], 1 }
 0x2e5   :  { %728 = vsyncpa [#allocation4], 1 }

</bundles_post_ra>
